<compile_context>
chip_gen: v5e
topology: v5e:2x2
jax: 0.10.0
libtpu: 0.0.40
codegen_flags: <defaults>
</compile_context>

<pallas_src>
import numpy as np
import jax
import jax.numpy as jnp
from jax.experimental import pallas as pl
from jax.experimental.pallas import tpu as pltpu

# ---------------------------------------------------------------------------
# Deterministic parameters (from the module __init__)
# ---------------------------------------------------------------------------
_K1D = np.array([0.05, 0.25, 0.4, 0.25, 0.05], dtype=np.float64)  # separable taps
LOSS_WEIGHT = 1.0
KSIZE = 5
PAD = KSIZE // 2        # 2


# ---------------------------------------------------------------------------
# Host-side construction of the composite Laplacian operators:
#   conv_gauss(mask4(conv_gauss(d)))  ==  L @ d @ R^T      (per plane)
# ---------------------------------------------------------------------------
def _conv_replicate_matrix(n):
    """(n, n) matrix of the 1-D 5-tap Gaussian conv with replicate padding."""
    a = np.zeros((n, n), dtype=np.float64)
    for r in range(n):
        for t in range(KSIZE):
            i = min(max(r + t - PAD, 0), n - 1)
            a[r, i] += _K1D[t]
    return a


def _mask_diag(n):
    # new_filter[r, c] = 4 * filtered[r, c] iff r and c are both even; 4 = 2*2.
    return np.diag([2.0 if i % 2 == 0 else 0.0 for i in range(n)])


def _laplacian_operators(H, W):
    a_h = _conv_replicate_matrix(H)
    a_w = _conv_replicate_matrix(W)
    lv = a_h @ _mask_diag(H) @ a_h                 # (H, H) left operator
    rt = (a_w @ _mask_diag(W) @ a_w).T             # (W, W) right operator (already transposed)
    return jnp.asarray(lv, jnp.float32), jnp.asarray(rt, jnp.float32)


# ---------------------------------------------------------------------------
# In-kernel helpers: f32-accurate matmul out of native bf16 MXU passes.
# ---------------------------------------------------------------------------
def _split_hi_lo(a):
    """f32 -> (bf16 hi, bf16 lo) with hi + lo ~= a (residual ~2^-18 |a|)."""
    hi = a.astype(jnp.bfloat16)
    lo = (a - hi.astype(jnp.float32)).astype(jnp.bfloat16)
    return hi, lo


def _mxu_dot(a_hi, a_lo, b_hi, b_lo):
    """4 accumulating bf16 MXU passes, f32 accumulation -> ~f32-accurate A@B."""
    mm = lambda u, v: jnp.dot(u, v, preferred_element_type=jnp.float32)
    return (mm(a_hi, b_hi) + mm(a_lo, b_hi)) + (mm(a_hi, b_lo) + mm(a_lo, b_lo))


# ---------------------------------------------------------------------------
# Fused Pallas kernel (Cb planes per grid step)
# ---------------------------------------------------------------------------
def _make_edge_loss_kernel(Cb):
    def kernel(lv_ref, rt_ref, x_ref, y_ref, out_ref):
        # Split the constant operators once per grid step (hoisted out of the
        # per-plane loop).  All elementwise (VPU) math stays f32 (v5e-safe).
        lv_hi, lv_lo = _split_hi_lo(lv_ref[...])
        rt_hi, rt_lo = _split_hi_lo(rt_ref[...])
        for c in range(Cb):                          # short, statically unrolled
            d = x_ref[c] - y_ref[c]                  # linearity: lap(x)-lap(y) == lap(x-y)
            d_hi, d_lo = _split_hi_lo(d)
            t = _mxu_dot(lv_hi, lv_lo, d_hi, d_lo)   # L @ d
            t_hi, t_lo = _split_hi_lo(t)
            f2 = _mxu_dot(t_hi, t_lo, rt_hi, rt_lo)  # (L @ d) @ R^T
            lap = d - f2
            out_ref[c] = lap * lap * LOSS_WEIGHT
    return kernel


# ---------------------------------------------------------------------------
# pallas_call wrapper
# ---------------------------------------------------------------------------
def _pick_plane_block(P, H, W):
    """Largest divisor of P (capped to keep the unroll short) whose
    double-buffered working set (x, y, out blocks x 2 buffers each) stays well
    inside the default scoped-VMEM limit on every TPU generation."""
    per_plane = H * W * 4
    budget = 12 * 1024 * 1024
    cb = 1
    for cand in range(1, min(P, 16) + 1):
        if P % cand == 0 and 6 * cand * per_plane <= budget:
            cb = cand
    return cb


def _edge_loss_planes(x_planes, y_planes, lv, rt):
    P, H, W = x_planes.shape
    Cb = _pick_plane_block(P, H, W)
    grid = (P // Cb,)
    plane_spec = pl.BlockSpec((Cb, H, W), lambda p: (p, 0, 0))

    params = dict(dimension_semantics=("parallel",))
    vmem_needed = 6 * Cb * H * W * 4 + 2 * (H * H + W * W) * 4 + (1 << 20)
    if vmem_needed > 24 * 1024 * 1024:
        # Large planes: raise the scoped-VMEM limit (v5e/v6e have 128 MiB).
        # TODO(synk): strip tiling for v7x (64 MiB VMEM) at >= ~1080p planes.
        params["vmem_limit_bytes"] = min(100 * 1024 * 1024, vmem_needed + (8 << 20))

    return pl.pallas_call(
        _make_edge_loss_kernel(Cb),
        out_shape=jax.ShapeDtypeStruct((P, H, W), jnp.float32),
        grid=grid,
        in_specs=[
            pl.BlockSpec((H, H), lambda p: (0, 0)),   # L   (same block every step)
            pl.BlockSpec((W, W), lambda p: (0, 0)),   # R^T (same block every step)
            plane_spec,                               # x planes
            plane_spec,                               # y planes
        ],
        out_specs=plane_spec,
        compiler_params=pltpu.CompilerParams(**params),
    )(lv, rt, x_planes, y_planes)


@jax.jit
def edge_loss(x, y):
    """Pallas implementation of EdgeLoss.forward (reduction='none')."""
    x = x.astype(jnp.float32)
    y = y.astype(jnp.float32)
    N, C, H, W = x.shape
    lv, rt = _laplacian_operators(H, W)
    out = _edge_loss_planes(x.reshape(N * C, H, W), y.reshape(N * C, H, W), lv, rt)
    return out.reshape(N, C, H, W)


# ---------------------------------------------------------------------------
# Pure-JAX reference (correctness check only)
# ---------------------------------------------------------------------------
def _ref_conv_gauss(img):
    C = img.shape[1]
    k2d = np.outer(_K1D, _K1D).astype(np.float32)
    k = jnp.broadcast_to(jnp.asarray(k2d), (C, 1, KSIZE, KSIZE))
    pad = jnp.pad(img, ((0, 0), (0, 0), (PAD, PAD), (PAD, PAD)), mode='edge')
    return jax.lax.conv_general_dilated(
        pad, k, window_strides=(1, 1), padding='VALID',
        dimension_numbers=('NCHW', 'OIHW', 'NCHW'), feature_group_count=C)


def _ref_laplacian(img):
    filtered = _ref_conv_gauss(img)
    H, W = filtered.shape[2], filtered.shape[3]
    rows = jnp.arange(H)[:, None]
    cols = jnp.arange(W)[None, :]
    mask = jnp.where((rows % 2 == 0) & (cols % 2 == 0), 4.0, 0.0).astype(jnp.float32)
    new_filter = filtered * mask
    return img - _ref_conv_gauss(new_filter)


def _ref_edge_loss(x, y):
    d = _ref_laplacian(x) - _ref_laplacian(y)
    return d * d * LOSS_WEIGHT


# ---------------------------------------------------------------------------
if __name__ == "__main__":
    key = jax.random.PRNGKey(0)
    kx, ky = jax.random.split(key)
    N, C, H, W = 2, 3, 16, 16          # module hard-codes 3 channels
    x = jax.random.normal(kx, (N, C, H, W), dtype=jnp.float32)
    y = jax.random.normal(ky, (N, C, H, W), dtype=jnp.float32)

    out = jax.block_until_ready(edge_loss(x, y))
    assert out.shape == (N, C, H, W)

    ref = _ref_edge_loss(x, y)
    # Typical max error vs the f32 conv reference is ~1e-6; the tolerance only
    # leaves margin for the 2^-18 residuals of the bf16 hi/lo-split MXU passes.
    np.testing.assert_allclose(np.asarray(out), np.asarray(ref), rtol=2e-4, atol=2e-4)

    print("KERNEL_OK")
</pallas_src>

<mosaic_0001>
module attributes {stable_mosaic.version = 11 : i64} {
  func.func @kernel(%arg0: i32, %arg1: memref<16x16xf32, #tpu.memory_space<vmem>>, %arg2: memref<16x16xf32, #tpu.memory_space<vmem>>, %arg3: memref<6x16x16xf32, #tpu.memory_space<vmem>>, %arg4: memref<6x16x16xf32, #tpu.memory_space<vmem>>, %arg5: memref<6x16x16xf32, #tpu.memory_space<vmem>>) attributes {dimension_semantics = [#tpu.dimension_semantics<parallel>], iteration_bounds = array<i64: 1>, scalar_prefetch = 0 : i64, scratch_operands = 0 : i64, tpu.core_type = #tpu.core_type<tc>, window_params = [{pipeline_mode = #tpu.pipeline_mode<synchronous>, transform_indices = @transform_0, window_bounds = array<i64: 16, 16>}, {pipeline_mode = #tpu.pipeline_mode<synchronous>, transform_indices = @transform_1, window_bounds = array<i64: 16, 16>}, {transform_indices = @transform_2, window_bounds = array<i64: 6, 16, 16>}, {transform_indices = @transform_3, window_bounds = array<i64: 6, 16, 16>}, {transform_indices = @transform_4, window_bounds = array<i64: 6, 16, 16>}]} {
    %c0 = arith.constant 0 : index
    %c0_0 = arith.constant 0 : index
    %0 = vector.load %arg1[%c0, %c0_0] : memref<16x16xf32, #tpu.memory_space<vmem>>, vector<16x16xf32>
    %1 = arith.truncf %0 : vector<16x16xf32> to vector<16x16xbf16>
    %2 = arith.extf %1 : vector<16x16xbf16> to vector<16x16xf32>
    %3 = arith.subf %0, %2 : vector<16x16xf32>
    %4 = arith.truncf %3 : vector<16x16xf32> to vector<16x16xbf16>
    %c0_1 = arith.constant 0 : index
    %c0_2 = arith.constant 0 : index
    %5 = vector.load %arg2[%c0_1, %c0_2] : memref<16x16xf32, #tpu.memory_space<vmem>>, vector<16x16xf32>
    %6 = arith.truncf %5 : vector<16x16xf32> to vector<16x16xbf16>
    %7 = arith.extf %6 : vector<16x16xbf16> to vector<16x16xf32>
    %8 = arith.subf %5, %7 : vector<16x16xf32>
    %9 = arith.truncf %8 : vector<16x16xf32> to vector<16x16xbf16>
    %c0_3 = arith.constant 0 : index
    %c0_4 = arith.constant 0 : index
    %c0_5 = arith.constant 0 : index
    %10 = vector.load %arg3[%c0_3, %c0_4, %c0_5] : memref<6x16x16xf32, #tpu.memory_space<vmem>>, vector<1x16x16xf32>
    %11 = vector.shape_cast %10 : vector<1x16x16xf32> to vector<16x16xf32>
    %c0_6 = arith.constant 0 : index
    %c0_7 = arith.constant 0 : index
    %c0_8 = arith.constant 0 : index
    %12 = vector.load %arg4[%c0_6, %c0_7, %c0_8] : memref<6x16x16xf32, #tpu.memory_space<vmem>>, vector<1x16x16xf32>
    %13 = vector.shape_cast %12 : vector<1x16x16xf32> to vector<16x16xf32>
    %14 = arith.subf %11, %13 : vector<16x16xf32>
    %15 = arith.truncf %14 : vector<16x16xf32> to vector<16x16xbf16>
    %16 = arith.extf %15 : vector<16x16xbf16> to vector<16x16xf32>
    %17 = arith.subf %14, %16 : vector<16x16xf32>
    %18 = arith.truncf %17 : vector<16x16xf32> to vector<16x16xbf16>
    %cst = arith.constant dense<0.000000e+00> : vector<16x16xf32>
    %19 = tpu.matmul %1, %15, %cst {dimension_numbers = #tpu.dot_dimension_numbers<[1], [0], [0], [1], [0, 0, 1, 1], [], []>} : vector<16x16xbf16>, vector<16x16xbf16>, vector<16x16xf32> -> vector<16x16xf32>
    %cst_9 = arith.constant dense<0.000000e+00> : vector<16x16xf32>
    %20 = tpu.matmul %4, %15, %cst_9 {dimension_numbers = #tpu.dot_dimension_numbers<[1], [0], [0], [1], [0, 0, 1, 1], [], []>} : vector<16x16xbf16>, vector<16x16xbf16>, vector<16x16xf32> -> vector<16x16xf32>
    %21 = arith.addf %19, %20 : vector<16x16xf32>
    %cst_10 = arith.constant dense<0.000000e+00> : vector<16x16xf32>
    %22 = tpu.matmul %1, %18, %cst_10 {dimension_numbers = #tpu.dot_dimension_numbers<[1], [0], [0], [1], [0, 0, 1, 1], [], []>} : vector<16x16xbf16>, vector<16x16xbf16>, vector<16x16xf32> -> vector<16x16xf32>
    %cst_11 = arith.constant dense<0.000000e+00> : vector<16x16xf32>
    %23 = tpu.matmul %4, %18, %cst_11 {dimension_numbers = #tpu.dot_dimension_numbers<[1], [0], [0], [1], [0, 0, 1, 1], [], []>} : vector<16x16xbf16>, vector<16x16xbf16>, vector<16x16xf32> -> vector<16x16xf32>
    %24 = arith.addf %22, %23 : vector<16x16xf32>
    %25 = arith.addf %21, %24 : vector<16x16xf32>
    %26 = arith.truncf %25 : vector<16x16xf32> to vector<16x16xbf16>
    %27 = arith.extf %26 : vector<16x16xbf16> to vector<16x16xf32>
    %28 = arith.subf %25, %27 : vector<16x16xf32>
    %29 = arith.truncf %28 : vector<16x16xf32> to vector<16x16xbf16>
    %cst_12 = arith.constant dense<0.000000e+00> : vector<16x16xf32>
    %30 = tpu.matmul %26, %6, %cst_12 {dimension_numbers = #tpu.dot_dimension_numbers<[1], [0], [0], [1], [0, 0, 1, 1], [], []>} : vector<16x16xbf16>, vector<16x16xbf16>, vector<16x16xf32> -> vector<16x16xf32>
    %cst_13 = arith.constant dense<0.000000e+00> : vector<16x16xf32>
    %31 = tpu.matmul %29, %6, %cst_13 {dimension_numbers = #tpu.dot_dimension_numbers<[1], [0], [0], [1], [0, 0, 1, 1], [], []>} : vector<16x16xbf16>, vector<16x16xbf16>, vector<16x16xf32> -> vector<16x16xf32>
    %32 = arith.addf %30, %31 : vector<16x16xf32>
    %cst_14 = arith.constant dense<0.000000e+00> : vector<16x16xf32>
    %33 = tpu.matmul %26, %9, %cst_14 {dimension_numbers = #tpu.dot_dimension_numbers<[1], [0], [0], [1], [0, 0, 1, 1], [], []>} : vector<16x16xbf16>, vector<16x16xbf16>, vector<16x16xf32> -> vector<16x16xf32>
    %cst_15 = arith.constant dense<0.000000e+00> : vector<16x16xf32>
    %34 = tpu.matmul %29, %9, %cst_15 {dimension_numbers = #tpu.dot_dimension_numbers<[1], [0], [0], [1], [0, 0, 1, 1], [], []>} : vector<16x16xbf16>, vector<16x16xbf16>, vector<16x16xf32> -> vector<16x16xf32>
    %35 = arith.addf %33, %34 : vector<16x16xf32>
    %36 = arith.addf %32, %35 : vector<16x16xf32>
    %37 = arith.subf %14, %36 : vector<16x16xf32>
    %38 = arith.mulf %37, %37 : vector<16x16xf32>
    %cst_16 = arith.constant 1.000000e+00 : f32
    %39 = vector.broadcast %cst_16 : f32 to vector<16x16xf32>
    %40 = arith.mulf %38, %39 : vector<16x16xf32>
    %c0_17 = arith.constant 0 : index
    %c0_18 = arith.constant 0 : index
    %c0_19 = arith.constant 0 : index
    %41 = vector.load %arg5[%c0_17, %c0_18, %c0_19] : memref<6x16x16xf32, #tpu.memory_space<vmem>>, vector<1x16x16xf32>
    %42 = vector.shape_cast %41 : vector<1x16x16xf32> to vector<16x16xf32>
    %43 = vector.shape_cast %40 : vector<16x16xf32> to vector<1x16x16xf32>
    tpu.vector_store %arg5[%c0_17, %c0_18, %c0_19], %43 {strides = array<i32>} : memref<6x16x16xf32, #tpu.memory_space<vmem>>, vector<1x16x16xf32>,
    %c1 = arith.constant 1 : index
    %c0_20 = arith.constant 0 : index
    %c0_21 = arith.constant 0 : index
    %44 = vector.load %arg3[%c1, %c0_20, %c0_21] : memref<6x16x16xf32, #tpu.memory_space<vmem>>, vector<1x16x16xf32>
    %45 = vector.shape_cast %44 : vector<1x16x16xf32> to vector<16x16xf32>
    %c1_22 = arith.constant 1 : index
    %c0_23 = arith.constant 0 : index
    %c0_24 = arith.constant 0 : index
    %46 = vector.load %arg4[%c1_22, %c0_23, %c0_24] : memref<6x16x16xf32, #tpu.memory_space<vmem>>, vector<1x16x16xf32>
    %47 = vector.shape_cast %46 : vector<1x16x16xf32> to vector<16x16xf32>
    %48 = arith.subf %45, %47 : vector<16x16xf32>
    %49 = arith.truncf %48 : vector<16x16xf32> to vector<16x16xbf16>
    %50 = arith.extf %49 : vector<16x16xbf16> to vector<16x16xf32>
    %51 = arith.subf %48, %50 : vector<16x16xf32>
    %52 = arith.truncf %51 : vector<16x16xf32> to vector<16x16xbf16>
    %cst_25 = arith.constant dense<0.000000e+00> : vector<16x16xf32>
    %53 = tpu.matmul %1, %49, %cst_25 {dimension_numbers = #tpu.dot_dimension_numbers<[1], [0], [0], [1], [0, 0, 1, 1], [], []>} : vector<16x16xbf16>, vector<16x16xbf16>, vector<16x16xf32> -> vector<16x16xf32>
    %cst_26 = arith.constant dense<0.000000e+00> : vector<16x16xf32>
    %54 = tpu.matmul %4, %49, %cst_26 {dimension_numbers = #tpu.dot_dimension_numbers<[1], [0], [0], [1], [0, 0, 1, 1], [], []>} : vector<16x16xbf16>, vector<16x16xbf16>, vector<16x16xf32> -> vector<16x16xf32>
    %55 = arith.addf %53, %54 : vector<16x16xf32>
    %cst_27 = arith.constant dense<0.000000e+00> : vector<16x16xf32>
    %56 = tpu.matmul %1, %52, %cst_27 {dimension_numbers = #tpu.dot_dimension_numbers<[1], [0], [0], [1], [0, 0, 1, 1], [], []>} : vector<16x16xbf16>, vector<16x16xbf16>, vector<16x16xf32> -> vector<16x16xf32>
    %cst_28 = arith.constant dense<0.000000e+00> : vector<16x16xf32>
    %57 = tpu.matmul %4, %52, %cst_28 {dimension_numbers = #tpu.dot_dimension_numbers<[1], [0], [0], [1], [0, 0, 1, 1], [], []>} : vector<16x16xbf16>, vector<16x16xbf16>, vector<16x16xf32> -> vector<16x16xf32>
    %58 = arith.addf %56, %57 : vector<16x16xf32>
    %59 = arith.addf %55, %58 : vector<16x16xf32>
    %60 = arith.truncf %59 : vector<16x16xf32> to vector<16x16xbf16>
    %61 = arith.extf %60 : vector<16x16xbf16> to vector<16x16xf32>
    %62 = arith.subf %59, %61 : vector<16x16xf32>
    %63 = arith.truncf %62 : vector<16x16xf32> to vector<16x16xbf16>
    %cst_29 = arith.constant dense<0.000000e+00> : vector<16x16xf32>
    %64 = tpu.matmul %60, %6, %cst_29 {dimension_numbers = #tpu.dot_dimension_numbers<[1], [0], [0], [1], [0, 0, 1, 1], [], []>} : vector<16x16xbf16>, vector<16x16xbf16>, vector<16x16xf32> -> vector<16x16xf32>
    %cst_30 = arith.constant dense<0.000000e+00> : vector<16x16xf32>
    %65 = tpu.matmul %63, %6, %cst_30 {dimension_numbers = #tpu.dot_dimension_numbers<[1], [0], [0], [1], [0, 0, 1, 1], [], []>} : vector<16x16xbf16>, vector<16x16xbf16>, vector<16x16xf32> -> vector<16x16xf32>
    %66 = arith.addf %64, %65 : vector<16x16xf32>
    %cst_31 = arith.constant dense<0.000000e+00> : vector<16x16xf32>
    %67 = tpu.matmul %60, %9, %cst_31 {dimension_numbers = #tpu.dot_dimension_numbers<[1], [0], [0], [1], [0, 0, 1, 1], [], []>} : vector<16x16xbf16>, vector<16x16xbf16>, vector<16x16xf32> -> vector<16x16xf32>
    %cst_32 = arith.constant dense<0.000000e+00> : vector<16x16xf32>
    %68 = tpu.matmul %63, %9, %cst_32 {dimension_numbers = #tpu.dot_dimension_numbers<[1], [0], [0], [1], [0, 0, 1, 1], [], []>} : vector<16x16xbf16>, vector<16x16xbf16>, vector<16x16xf32> -> vector<16x16xf32>
    %69 = arith.addf %67, %68 : vector<16x16xf32>
    %70 = arith.addf %66, %69 : vector<16x16xf32>
    %71 = arith.subf %48, %70 : vector<16x16xf32>
    %72 = arith.mulf %71, %71 : vector<16x16xf32>
    %cst_33 = arith.constant 1.000000e+00 : f32
    %73 = vector.broadcast %cst_33 : f32 to vector<16x16xf32>
    %74 = arith.mulf %72, %73 : vector<16x16xf32>
    %c1_34 = arith.constant 1 : index
    %c0_35 = arith.constant 0 : index
    %c0_36 = arith.constant 0 : index
    %75 = vector.load %arg5[%c1_34, %c0_35, %c0_36] : memref<6x16x16xf32, #tpu.memory_space<vmem>>, vector<1x16x16xf32>
    %76 = vector.shape_cast %75 : vector<1x16x16xf32> to vector<16x16xf32>
    %77 = vector.shape_cast %74 : vector<16x16xf32> to vector<1x16x16xf32>
    tpu.vector_store %arg5[%c1_34, %c0_35, %c0_36], %77 {strides = array<i32>} : memref<6x16x16xf32, #tpu.memory_space<vmem>>, vector<1x16x16xf32>,
    %c2 = arith.constant 2 : index
    %c0_37 = arith.constant 0 : index
    %c0_38 = arith.constant 0 : index
    %78 = vector.load %arg3[%c2, %c0_37, %c0_38] : memref<6x16x16xf32, #tpu.memory_space<vmem>>, vector<1x16x16xf32>
    %79 = vector.shape_cast %78 : vector<1x16x16xf32> to vector<16x16xf32>
    %c2_39 = arith.constant 2 : index
    %c0_40 = arith.constant 0 : index
    %c0_41 = arith.constant 0 : index
    %80 = vector.load %arg4[%c2_39, %c0_40, %c0_41] : memref<6x16x16xf32, #tpu.memory_space<vmem>>, vector<1x16x16xf32>
    %81 = vector.shape_cast %80 : vector<1x16x16xf32> to vector<16x16xf32>
    %82 = arith.subf %79, %81 : vector<16x16xf32>
    %83 = arith.truncf %82 : vector<16x16xf32> to vector<16x16xbf16>
    %84 = arith.extf %83 : vector<16x16xbf16> to vector<16x16xf32>
    %85 = arith.subf %82, %84 : vector<16x16xf32>
    %86 = arith.truncf %85 : vector<16x16xf32> to vector<16x16xbf16>
    %cst_42 = arith.constant dense<0.000000e+00> : vector<16x16xf32>
    %87 = tpu.matmul %1, %83, %cst_42 {dimension_numbers = #tpu.dot_dimension_numbers<[1], [0], [0], [1], [0, 0, 1, 1], [], []>} : vector<16x16xbf16>, vector<16x16xbf16>, vector<16x16xf32> -> vector<16x16xf32>
    %cst_43 = arith.constant dense<0.000000e+00> : vector<16x16xf32>
    %88 = tpu.matmul %4, %83, %cst_43 {dimension_numbers = #tpu.dot_dimension_numbers<[1], [0], [0], [1], [0, 0, 1, 1], [], []>} : vector<16x16xbf16>, vector<16x16xbf16>, vector<16x16xf32> -> vector<16x16xf32>
    %89 = arith.addf %87, %88 : vector<16x16xf32>
    %cst_44 = arith.constant dense<0.000000e+00> : vector<16x16xf32>
    %90 = tpu.matmul %1, %86, %cst_44 {dimension_numbers = #tpu.dot_dimension_numbers<[1], [0], [0], [1], [0, 0, 1, 1], [], []>} : vector<16x16xbf16>, vector<16x16xbf16>, vector<16x16xf32> -> vector<16x16xf32>
    %cst_45 = arith.constant dense<0.000000e+00> : vector<16x16xf32>
    %91 = tpu.matmul %4, %86, %cst_45 {dimension_numbers = #tpu.dot_dimension_numbers<[1], [0], [0], [1], [0, 0, 1, 1], [], []>} : vector<16x16xbf16>, vector<16x16xbf16>, vector<16x16xf32> -> vector<16x16xf32>
    %92 = arith.addf %90, %91 : vector<16x16xf32>
    %93 = arith.addf %89, %92 : vector<16x16xf32>
    %94 = arith.truncf %93 : vector<16x16xf32> to vector<16x16xbf16>
    %95 = arith.extf %94 : vector<16x16xbf16> to vector<16x16xf32>
    %96 = arith.subf %93, %95 : vector<16x16xf32>
    %97 = arith.truncf %96 : vector<16x16xf32> to vector<16x16xbf16>
    %cst_46 = arith.constant dense<0.000000e+00> : vector<16x16xf32>
    %98 = tpu.matmul %94, %6, %cst_46 {dimension_numbers = #tpu.dot_dimension_numbers<[1], [0], [0], [1], [0, 0, 1, 1], [], []>} : vector<16x16xbf16>, vector<16x16xbf16>, vector<16x16xf32> -> vector<16x16xf32>
    %cst_47 = arith.constant dense<0.000000e+00> : vector<16x16xf32>
    %99 = tpu.matmul %97, %6, %cst_47 {dimension_numbers = #tpu.dot_dimension_numbers<[1], [0], [0], [1], [0, 0, 1, 1], [], []>} : vector<16x16xbf16>, vector<16x16xbf16>, vector<16x16xf32> -> vector<16x16xf32>
    %100 = arith.addf %98, %99 : vector<16x16xf32>
    %cst_48 = arith.constant dense<0.000000e+00> : vector<16x16xf32>
    %101 = tpu.matmul %94, %9, %cst_48 {dimension_numbers = #tpu.dot_dimension_numbers<[1], [0], [0], [1], [0, 0, 1, 1], [], []>} : vector<16x16xbf16>, vector<16x16xbf16>, vector<16x16xf32> -> vector<16x16xf32>
    %cst_49 = arith.constant dense<0.000000e+00> : vector<16x16xf32>
    %102 = tpu.matmul %97, %9, %cst_49 {dimension_numbers = #tpu.dot_dimension_numbers<[1], [0], [0], [1], [0, 0, 1, 1], [], []>} : vector<16x16xbf16>, vector<16x16xbf16>, vector<16x16xf32> -> vector<16x16xf32>
    %103 = arith.addf %101, %102 : vector<16x16xf32>
    %104 = arith.addf %100, %103 : vector<16x16xf32>
    %105 = arith.subf %82, %104 : vector<16x16xf32>
    %106 = arith.mulf %105, %105 : vector<16x16xf32>
    %cst_50 = arith.constant 1.000000e+00 : f32
    %107 = vector.broadcast %cst_50 : f32 to vector<16x16xf32>
    %108 = arith.mulf %106, %107 : vector<16x16xf32>
    %c2_51 = arith.constant 2 : index
    %c0_52 = arith.constant 0 : index
    %c0_53 = arith.constant 0 : index
    %109 = vector.load %arg5[%c2_51, %c0_52, %c0_53] : memref<6x16x16xf32, #tpu.memory_space<vmem>>, vector<1x16x16xf32>
    %110 = vector.shape_cast %109 : vector<1x16x16xf32> to vector<16x16xf32>
    %111 = vector.shape_cast %108 : vector<16x16xf32> to vector<1x16x16xf32>
    tpu.vector_store %arg5[%c2_51, %c0_52, %c0_53], %111 {strides = array<i32>} : memref<6x16x16xf32, #tpu.memory_space<vmem>>, vector<1x16x16xf32>,
    %c3 = arith.constant 3 : index
    %c0_54 = arith.constant 0 : index
    %c0_55 = arith.constant 0 : index
    %112 = vector.load %arg3[%c3, %c0_54, %c0_55] : memref<6x16x16xf32, #tpu.memory_space<vmem>>, vector<1x16x16xf32>
    %113 = vector.shape_cast %112 : vector<1x16x16xf32> to vector<16x16xf32>
    %c3_56 = arith.constant 3 : index
    %c0_57 = arith.constant 0 : index
    %c0_58 = arith.constant 0 : index
    %114 = vector.load %arg4[%c3_56, %c0_57, %c0_58] : memref<6x16x16xf32, #tpu.memory_space<vmem>>, vector<1x16x16xf32>
    %115 = vector.shape_cast %114 : vector<1x16x16xf32> to vector<16x16xf32>
    %116 = arith.subf %113, %115 : vector<16x16xf32>
    %117 = arith.truncf %116 : vector<16x16xf32> to vector<16x16xbf16>
    %118 = arith.extf %117 : vector<16x16xbf16> to vector<16x16xf32>
    %119 = arith.subf %116, %118 : vector<16x16xf32>
    %120 = arith.truncf %119 : vector<16x16xf32> to vector<16x16xbf16>
    %cst_59 = arith.constant dense<0.000000e+00> : vector<16x16xf32>
    %121 = tpu.matmul %1, %117, %cst_59 {dimension_numbers = #tpu.dot_dimension_numbers<[1], [0], [0], [1], [0, 0, 1, 1], [], []>} : vector<16x16xbf16>, vector<16x16xbf16>, vector<16x16xf32> -> vector<16x16xf32>
    %cst_60 = arith.constant dense<0.000000e+00> : vector<16x16xf32>
    %122 = tpu.matmul %4, %117, %cst_60 {dimension_numbers = #tpu.dot_dimension_numbers<[1], [0], [0], [1], [0, 0, 1, 1], [], []>} : vector<16x16xbf16>, vector<16x16xbf16>, vector<16x16xf32> -> vector<16x16xf32>
    %123 = arith.addf %121, %122 : vector<16x16xf32>
    %cst_61 = arith.constant dense<0.000000e+00> : vector<16x16xf32>
    %124 = tpu.matmul %1, %120, %cst_61 {dimension_numbers = #tpu.dot_dimension_numbers<[1], [0], [0], [1], [0, 0, 1, 1], [], []>} : vector<16x16xbf16>, vector<16x16xbf16>, vector<16x16xf32> -> vector<16x16xf32>
    %cst_62 = arith.constant dense<0.000000e+00> : vector<16x16xf32>
    %125 = tpu.matmul %4, %120, %cst_62 {dimension_numbers = #tpu.dot_dimension_numbers<[1], [0], [0], [1], [0, 0, 1, 1], [], []>} : vector<16x16xbf16>, vector<16x16xbf16>, vector<16x16xf32> -> vector<16x16xf32>
    %126 = arith.addf %124, %125 : vector<16x16xf32>
    %127 = arith.addf %123, %126 : vector<16x16xf32>
    %128 = arith.truncf %127 : vector<16x16xf32> to vector<16x16xbf16>
    %129 = arith.extf %128 : vector<16x16xbf16> to vector<16x16xf32>
    %130 = arith.subf %127, %129 : vector<16x16xf32>
    %131 = arith.truncf %130 : vector<16x16xf32> to vector<16x16xbf16>
    %cst_63 = arith.constant dense<0.000000e+00> : vector<16x16xf32>
    %132 = tpu.matmul %128, %6, %cst_63 {dimension_numbers = #tpu.dot_dimension_numbers<[1], [0], [0], [1], [0, 0, 1, 1], [], []>} : vector<16x16xbf16>, vector<16x16xbf16>, vector<16x16xf32> -> vector<16x16xf32>
    %cst_64 = arith.constant dense<0.000000e+00> : vector<16x16xf32>
    %133 = tpu.matmul %131, %6, %cst_64 {dimension_numbers = #tpu.dot_dimension_numbers<[1], [0], [0], [1], [0, 0, 1, 1], [], []>} : vector<16x16xbf16>, vector<16x16xbf16>, vector<16x16xf32> -> vector<16x16xf32>
    %134 = arith.addf %132, %133 : vector<16x16xf32>
    %cst_65 = arith.constant dense<0.000000e+00> : vector<16x16xf32>
    %135 = tpu.matmul %128, %9, %cst_65 {dimension_numbers = #tpu.dot_dimension_numbers<[1], [0], [0], [1], [0, 0, 1, 1], [], []>} : vector<16x16xbf16>, vector<16x16xbf16>, vector<16x16xf32> -> vector<16x16xf32>
    %cst_66 = arith.constant dense<0.000000e+00> : vector<16x16xf32>
    %136 = tpu.matmul %131, %9, %cst_66 {dimension_numbers = #tpu.dot_dimension_numbers<[1], [0], [0], [1], [0, 0, 1, 1], [], []>} : vector<16x16xbf16>, vector<16x16xbf16>, vector<16x16xf32> -> vector<16x16xf32>
    %137 = arith.addf %135, %136 : vector<16x16xf32>
    %138 = arith.addf %134, %137 : vector<16x16xf32>
    %139 = arith.subf %116, %138 : vector<16x16xf32>
    %140 = arith.mulf %139, %139 : vector<16x16xf32>
    %cst_67 = arith.constant 1.000000e+00 : f32
    %141 = vector.broadcast %cst_67 : f32 to vector<16x16xf32>
    %142 = arith.mulf %140, %141 : vector<16x16xf32>
    %c3_68 = arith.constant 3 : index
    %c0_69 = arith.constant 0 : index
    %c0_70 = arith.constant 0 : index
    %143 = vector.load %arg5[%c3_68, %c0_69, %c0_70] : memref<6x16x16xf32, #tpu.memory_space<vmem>>, vector<1x16x16xf32>
    %144 = vector.shape_cast %143 : vector<1x16x16xf32> to vector<16x16xf32>
    %145 = vector.shape_cast %142 : vector<16x16xf32> to vector<1x16x16xf32>
    tpu.vector_store %arg5[%c3_68, %c0_69, %c0_70], %145 {strides = array<i32>} : memref<6x16x16xf32, #tpu.memory_space<vmem>>, vector<1x16x16xf32>,
    %c4 = arith.constant 4 : index
    %c0_71 = arith.constant 0 : index
    %c0_72 = arith.constant 0 : index
    %146 = vector.load %arg3[%c4, %c0_71, %c0_72] : memref<6x16x16xf32, #tpu.memory_space<vmem>>, vector<1x16x16xf32>
    %147 = vector.shape_cast %146 : vector<1x16x16xf32> to vector<16x16xf32>
    %c4_73 = arith.constant 4 : index
    %c0_74 = arith.constant 0 : index
    %c0_75 = arith.constant 0 : index
    %148 = vector.load %arg4[%c4_73, %c0_74, %c0_75] : memref<6x16x16xf32, #tpu.memory_space<vmem>>, vector<1x16x16xf32>
    %149 = vector.shape_cast %148 : vector<1x16x16xf32> to vector<16x16xf32>
    %150 = arith.subf %147, %149 : vector<16x16xf32>
    %151 = arith.truncf %150 : vector<16x16xf32> to vector<16x16xbf16>
    %152 = arith.extf %151 : vector<16x16xbf16> to vector<16x16xf32>
    %153 = arith.subf %150, %152 : vector<16x16xf32>
    %154 = arith.truncf %153 : vector<16x16xf32> to vector<16x16xbf16>
    %cst_76 = arith.constant dense<0.000000e+00> : vector<16x16xf32>
    %155 = tpu.matmul %1, %151, %cst_76 {dimension_numbers = #tpu.dot_dimension_numbers<[1], [0], [0], [1], [0, 0, 1, 1], [], []>} : vector<16x16xbf16>, vector<16x16xbf16>, vector<16x16xf32> -> vector<16x16xf32>
    %cst_77 = arith.constant dense<0.000000e+00> : vector<16x16xf32>
    %156 = tpu.matmul %4, %151, %cst_77 {dimension_numbers = #tpu.dot_dimension_numbers<[1], [0], [0], [1], [0, 0, 1, 1], [], []>} : vector<16x16xbf16>, vector<16x16xbf16>, vector<16x16xf32> -> vector<16x16xf32>
    %157 = arith.addf %155, %156 : vector<16x16xf32>
    %cst_78 = arith.constant dense<0.000000e+00> : vector<16x16xf32>
    %158 = tpu.matmul %1, %154, %cst_78 {dimension_numbers = #tpu.dot_dimension_numbers<[1], [0], [0], [1], [0, 0, 1, 1], [], []>} : vector<16x16xbf16>, vector<16x16xbf16>, vector<16x16xf32> -> vector<16x16xf32>
    %cst_79 = arith.constant dense<0.000000e+00> : vector<16x16xf32>
    %159 = tpu.matmul %4, %154, %cst_79 {dimension_numbers = #tpu.dot_dimension_numbers<[1], [0], [0], [1], [0, 0, 1, 1], [], []>} : vector<16x16xbf16>, vector<16x16xbf16>, vector<16x16xf32> -> vector<16x16xf32>
    %160 = arith.addf %158, %159 : vector<16x16xf32>
    %161 = arith.addf %157, %160 : vector<16x16xf32>
    %162 = arith.truncf %161 : vector<16x16xf32> to vector<16x16xbf16>
    %163 = arith.extf %162 : vector<16x16xbf16> to vector<16x16xf32>
    %164 = arith.subf %161, %163 : vector<16x16xf32>
    %165 = arith.truncf %164 : vector<16x16xf32> to vector<16x16xbf16>
    %cst_80 = arith.constant dense<0.000000e+00> : vector<16x16xf32>
    %166 = tpu.matmul %162, %6, %cst_80 {dimension_numbers = #tpu.dot_dimension_numbers<[1], [0], [0], [1], [0, 0, 1, 1], [], []>} : vector<16x16xbf16>, vector<16x16xbf16>, vector<16x16xf32> -> vector<16x16xf32>
    %cst_81 = arith.constant dense<0.000000e+00> : vector<16x16xf32>
    %167 = tpu.matmul %165, %6, %cst_81 {dimension_numbers = #tpu.dot_dimension_numbers<[1], [0], [0], [1], [0, 0, 1, 1], [], []>} : vector<16x16xbf16>, vector<16x16xbf16>, vector<16x16xf32> -> vector<16x16xf32>
    %168 = arith.addf %166, %167 : vector<16x16xf32>
    %cst_82 = arith.constant dense<0.000000e+00> : vector<16x16xf32>
    %169 = tpu.matmul %162, %9, %cst_82 {dimension_numbers = #tpu.dot_dimension_numbers<[1], [0], [0], [1], [0, 0, 1, 1], [], []>} : vector<16x16xbf16>, vector<16x16xbf16>, vector<16x16xf32> -> vector<16x16xf32>
    %cst_83 = arith.constant dense<0.000000e+00> : vector<16x16xf32>
    %170 = tpu.matmul %165, %9, %cst_83 {dimension_numbers = #tpu.dot_dimension_numbers<[1], [0], [0], [1], [0, 0, 1, 1], [], []>} : vector<16x16xbf16>, vector<16x16xbf16>, vector<16x16xf32> -> vector<16x16xf32>
    %171 = arith.addf %169, %170 : vector<16x16xf32>
    %172 = arith.addf %168, %171 : vector<16x16xf32>
    %173 = arith.subf %150, %172 : vector<16x16xf32>
    %174 = arith.mulf %173, %173 : vector<16x16xf32>
    %cst_84 = arith.constant 1.000000e+00 : f32
    %175 = vector.broadcast %cst_84 : f32 to vector<16x16xf32>
    %176 = arith.mulf %174, %175 : vector<16x16xf32>
    %c4_85 = arith.constant 4 : index
    %c0_86 = arith.constant 0 : index
    %c0_87 = arith.constant 0 : index
    %177 = vector.load %arg5[%c4_85, %c0_86, %c0_87] : memref<6x16x16xf32, #tpu.memory_space<vmem>>, vector<1x16x16xf32>
    %178 = vector.shape_cast %177 : vector<1x16x16xf32> to vector<16x16xf32>
    %179 = vector.shape_cast %176 : vector<16x16xf32> to vector<1x16x16xf32>
    tpu.vector_store %arg5[%c4_85, %c0_86, %c0_87], %179 {strides = array<i32>} : memref<6x16x16xf32, #tpu.memory_space<vmem>>, vector<1x16x16xf32>,
    %c5 = arith.constant 5 : index
    %c0_88 = arith.constant 0 : index
    %c0_89 = arith.constant 0 : index
    %180 = vector.load %arg3[%c5, %c0_88, %c0_89] : memref<6x16x16xf32, #tpu.memory_space<vmem>>, vector<1x16x16xf32>
    %181 = vector.shape_cast %180 : vector<1x16x16xf32> to vector<16x16xf32>
    %c5_90 = arith.constant 5 : index
    %c0_91 = arith.constant 0 : index
    %c0_92 = arith.constant 0 : index
    %182 = vector.load %arg4[%c5_90, %c0_91, %c0_92] : memref<6x16x16xf32, #tpu.memory_space<vmem>>, vector<1x16x16xf32>
    %183 = vector.shape_cast %182 : vector<1x16x16xf32> to vector<16x16xf32>
    %184 = arith.subf %181, %183 : vector<16x16xf32>
    %185 = arith.truncf %184 : vector<16x16xf32> to vector<16x16xbf16>
    %186 = arith.extf %185 : vector<16x16xbf16> to vector<16x16xf32>
    %187 = arith.subf %184, %186 : vector<16x16xf32>
    %188 = arith.truncf %187 : vector<16x16xf32> to vector<16x16xbf16>
    %cst_93 = arith.constant dense<0.000000e+00> : vector<16x16xf32>
    %189 = tpu.matmul %1, %185, %cst_93 {dimension_numbers = #tpu.dot_dimension_numbers<[1], [0], [0], [1], [0, 0, 1, 1], [], []>} : vector<16x16xbf16>, vector<16x16xbf16>, vector<16x16xf32> -> vector<16x16xf32>
    %cst_94 = arith.constant dense<0.000000e+00> : vector<16x16xf32>
    %190 = tpu.matmul %4, %185, %cst_94 {dimension_numbers = #tpu.dot_dimension_numbers<[1], [0], [0], [1], [0, 0, 1, 1], [], []>} : vector<16x16xbf16>, vector<16x16xbf16>, vector<16x16xf32> -> vector<16x16xf32>
    %191 = arith.addf %189, %190 : vector<16x16xf32>
    %cst_95 = arith.constant dense<0.000000e+00> : vector<16x16xf32>
    %192 = tpu.matmul %1, %188, %cst_95 {dimension_numbers = #tpu.dot_dimension_numbers<[1], [0], [0], [1], [0, 0, 1, 1], [], []>} : vector<16x16xbf16>, vector<16x16xbf16>, vector<16x16xf32> -> vector<16x16xf32>
    %cst_96 = arith.constant dense<0.000000e+00> : vector<16x16xf32>
    %193 = tpu.matmul %4, %188, %cst_96 {dimension_numbers = #tpu.dot_dimension_numbers<[1], [0], [0], [1], [0, 0, 1, 1], [], []>} : vector<16x16xbf16>, vector<16x16xbf16>, vector<16x16xf32> -> vector<16x16xf32>
    %194 = arith.addf %192, %193 : vector<16x16xf32>
    %195 = arith.addf %191, %194 : vector<16x16xf32>
    %196 = arith.truncf %195 : vector<16x16xf32> to vector<16x16xbf16>
    %197 = arith.extf %196 : vector<16x16xbf16> to vector<16x16xf32>
    %198 = arith.subf %195, %197 : vector<16x16xf32>
    %199 = arith.truncf %198 : vector<16x16xf32> to vector<16x16xbf16>
    %cst_97 = arith.constant dense<0.000000e+00> : vector<16x16xf32>
    %200 = tpu.matmul %196, %6, %cst_97 {dimension_numbers = #tpu.dot_dimension_numbers<[1], [0], [0], [1], [0, 0, 1, 1], [], []>} : vector<16x16xbf16>, vector<16x16xbf16>, vector<16x16xf32> -> vector<16x16xf32>
    %cst_98 = arith.constant dense<0.000000e+00> : vector<16x16xf32>
    %201 = tpu.matmul %199, %6, %cst_98 {dimension_numbers = #tpu.dot_dimension_numbers<[1], [0], [0], [1], [0, 0, 1, 1], [], []>} : vector<16x16xbf16>, vector<16x16xbf16>, vector<16x16xf32> -> vector<16x16xf32>
    %202 = arith.addf %200, %201 : vector<16x16xf32>
    %cst_99 = arith.constant dense<0.000000e+00> : vector<16x16xf32>
    %203 = tpu.matmul %196, %9, %cst_99 {dimension_numbers = #tpu.dot_dimension_numbers<[1], [0], [0], [1], [0, 0, 1, 1], [], []>} : vector<16x16xbf16>, vector<16x16xbf16>, vector<16x16xf32> -> vector<16x16xf32>
    %cst_100 = arith.constant dense<0.000000e+00> : vector<16x16xf32>
    %204 = tpu.matmul %199, %9, %cst_100 {dimension_numbers = #tpu.dot_dimension_numbers<[1], [0], [0], [1], [0, 0, 1, 1], [], []>} : vector<16x16xbf16>, vector<16x16xbf16>, vector<16x16xf32> -> vector<16x16xf32>
    %205 = arith.addf %203, %204 : vector<16x16xf32>
    %206 = arith.addf %202, %205 : vector<16x16xf32>
    %207 = arith.subf %184, %206 : vector<16x16xf32>
    %208 = arith.mulf %207, %207 : vector<16x16xf32>
    %cst_101 = arith.constant 1.000000e+00 : f32
    %209 = vector.broadcast %cst_101 : f32 to vector<16x16xf32>
    %210 = arith.mulf %208, %209 : vector<16x16xf32>
    %c5_102 = arith.constant 5 : index
    %c0_103 = arith.constant 0 : index
    %c0_104 = arith.constant 0 : index
    %211 = vector.load %arg5[%c5_102, %c0_103, %c0_104] : memref<6x16x16xf32, #tpu.memory_space<vmem>>, vector<1x16x16xf32>
    %212 = vector.shape_cast %211 : vector<1x16x16xf32> to vector<16x16xf32>
    %213 = vector.shape_cast %210 : vector<16x16xf32> to vector<1x16x16xf32>
    tpu.vector_store %arg5[%c5_102, %c0_103, %c0_104], %213 {strides = array<i32>} : memref<6x16x16xf32, #tpu.memory_space<vmem>>, vector<1x16x16xf32>,
    return
  }
  func.func @transform_0(%arg0: i32) -> (i32, i32) {
    %c0_i32 = arith.constant 0 : i32
    %c0_i32_0 = arith.constant 0 : i32
    %c0_i32_1 = arith.constant 0 : i32
    return %c0_i32, %c0_i32_0 : i32, i32
  }
  func.func @transform_1(%arg0: i32) -> (i32, i32) {
    %c0_i32 = arith.constant 0 : i32
    %c0_i32_0 = arith.constant 0 : i32
    %c0_i32_1 = arith.constant 0 : i32
    return %c0_i32, %c0_i32_0 : i32, i32
  }
  func.func @transform_2(%arg0: i32) -> (i32, i32, i32) {
    %c0_i32 = arith.constant 0 : i32
    %c0_i32_0 = arith.constant 0 : i32
    %c0_i32_1 = arith.constant 0 : i32
    return %arg0, %c0_i32, %c0_i32_0 : i32, i32, i32
  }
  func.func @transform_3(%arg0: i32) -> (i32, i32, i32) {
    %c0_i32 = arith.constant 0 : i32
    %c0_i32_0 = arith.constant 0 : i32
    %c0_i32_1 = arith.constant 0 : i32
    return %arg0, %c0_i32, %c0_i32_0 : i32, i32, i32
  }
  func.func @transform_4(%arg0: i32) -> (i32, i32, i32) {
    %c0_i32 = arith.constant 0 : i32
    %c0_i32_0 = arith.constant 0 : i32
    %c0_i32_1 = arith.constant 0 : i32
    return %arg0, %c0_i32, %c0_i32_0 : i32, i32, i32
  }
}

</mosaic_0001>

<bundles_post_ra>
// kernel: edge_loss.1
= control target key start
LH: loop header
LB: loop body
LE: loop exit
PB: predicated region body
PF: predicated region fallthrough
CT: control target
= control target key end

     0   :  { %9 = vsyncpa [#allocation3], 0  ;;  %s1541_s0 = inlined_call_operand.hbm [shape: f32[16,16], index: 0, kind: input, shape index: {}]   ;;  %s1542_s1 = inlined_call_operand.hbm [shape: f32[16,16], index: 1, kind: input, shape index: {}]   ;;  %s1543_s2 = inlined_call_operand.hbm [shape: f32[6,16,16], index: 2, kind: input, shape index: {}]   ;;  %s1544_s3 = inlined_call_operand.hbm [shape: f32[6,16,16], index: 3, kind: input, shape index: {}]   ;;  %s1545_s4 = inlined_call_operand.hbm [shape: f32[6,16,16], index: 4, kind: output, shape index: {}]  }
   0x1   :  { %10 = vsyncpa [#allocation6], 0 }
   0x2   :  { %11 = vsyncpa [#allocation9], 0 }
   0x3   :  { %12 = vsyncpa [#allocation4], 0  ;;  %s30_s17 = sshll.u32 %s1542_s1, 4  ;;  %s1291_s18 = smov [#allocation5]   ;;  %s31_s17 = int_to_ptr.hbm [resolvable:$true] %s30_s17 }
   0x4   :  { %s32_s19 = sshll.u32 %s1291_s18, 4  ;;  %s17_s22 = sshll.u32 %s1541_s0, 4  ;;  %s33_s19 = int_to_ptr.vmem [resolvable:$true] %s32_s19  ;;  %s18_s22 = int_to_ptr.hbm [resolvable:$true] %s17_s22 }
   0x5   :  { %s1292_s23 = smov 128   ;;  %s1293_s24 = smov 8  }
   0x6   :  { %38 = dma.hbm_to_vmem [thread:$0]  %s31_s17, 256, %s33_s19, [#allocation6], %s1292_s23, %s1292_s23, %s1293_s24  }
   0x7   :  { %s1294_s25 = smov [#allocation2]   ;;  %s43_s1 = sshll.u32 %s1543_s2, 4  ;;  %s44_s1 = int_to_ptr.hbm [resolvable:$true] %s43_s1 }
   0x8   :  { %s19_s26 = sshll.u32 %s1294_s25, 4  ;;  %s56_s30 = sshll.u32 %s1544_s3, 4  ;;  %s20_s26 = int_to_ptr.vmem [resolvable:$true] %s19_s26  ;;  %s57_s30 = int_to_ptr.hbm [resolvable:$true] %s56_s30 }
   0x9   :  { %25 = dma.hbm_to_vmem [thread:$0]  %s18_s22, 256, %s20_s26, [#allocation3], %s1292_s23, %s1292_s23, %s1293_s24  }
   0xa   :  { %s1295_s5 = smov [#allocation7]   ;;  %s1296_s7 = smov [#allocation8]  }
   0xb   :  { %s45_s6 = sshll.u32 %s1295_s5, 4  ;;  %s58_s2 = sshll.u32 %s1296_s7, 4  ;;  %s46_s6 = int_to_ptr.vmem [resolvable:$true] %s45_s6  ;;  %s59_s2 = int_to_ptr.vmem [resolvable:$true] %s58_s2 }
   0xc   :  { %51 = dma.hbm_to_vmem [thread:$0]  %s44_s1, 1536, %s46_s6, [#allocation6], %s1292_s23, %s1292_s23, %s1293_s24  }
   0xd   :  { %64 = dma.hbm_to_vmem [thread:$0]  %s57_s30, 1536, %s59_s2, [#allocation9], %s1292_s23, %s1292_s23, %s1293_s24  }
   0xe   :  { %1283 = dma.done.wait [#allocation3], 256  }
   0xf   :  { %1284 = vsyncadd [#allocation3], 4294967040 }
  0x10   :  { %1285 = dma.done.wait [#allocation6], 1792  }
  0x11   :  { %1286 = vsyncadd [#allocation6], 4294965504 }
  0x12   :  { %1287 = dma.done.wait [#allocation9], 1536  }
  0x13   :  { %1288 = vsyncadd [#allocation9], 4294965760  ;;  %v100_v0 = vld [vmem:[#allocation7] sm:$0xff]  ;;  %v101_v1 = vld [vmem:[#allocation7 + $0x8] sm:$0xff]  ;;  %vm119_vm0 = vcmask 130048   ;;  %s1297_s3 = smov [#allocation10]  }
  0x14   :  { %v102_v2 = vld [vmem:[#allocation8] sm:$0xff]  ;;  %v103_v3 = vld [vmem:[#allocation8 + $0x8] sm:$0xff]  ;;  %v91_v28 = vld [vmem:[#allocation5] sm:$0xff]  ;;  %s1091_s8 = sshll.u32 %s1297_s3, 4  ;;  %s1093_s11 = sshll.u32 %s1545_s4, 4  ;;  %s1092_s8 = int_to_ptr.vmem [resolvable:$true] %s1091_s8  ;;  %s1094_s11 = int_to_ptr.hbm [resolvable:$true] %s1093_s11 }
  0x15   :  { %v1347_v4 = vsub.f32 %v100_v0, %v102_v2  ;;  %v82_v5 = vld [vmem:[#allocation2] sm:$0xff]  ;;  %v83_v6 = vld [vmem:[#allocation2 + $0x8] sm:$0xff]  ;;  %v1349_v7 = vsub.f32 %v101_v1, %v103_v3  ;;  %v92_v29 = vld [vmem:[#allocation5 + $0x8] sm:$0xff]  ;;  %v93_v30 = vpack.c.bf16 %v91_v28, %v91_v28 }
  0x16   :  { %v84_v8 = vpack.c.bf16 %v82_v5, %v82_v5  ;;  %v85_v9 = vpack.c.bf16 %v83_v6, %v83_v6  ;;  %v94_v31 = vpack.c.bf16 %v92_v29, %v92_v29  ;;  %v278_v40 = vld [vmem:[#allocation7 + $0x10] sm:$0xff]  ;;  %v279_v41 = vld [vmem:[#allocation7 + $0x18] sm:$0xff] }
  0x17   :  { %v106_v10 = vpack.c.bf16 %v1347_v4, %v1347_v4  ;;  %v107_v11 = vpack.c.bf16 %v1349_v7, %v1349_v7  ;;  %v95_v32 = vunpack.c.l.bf16 %v93_v30  ;;  %v198_v36 = vunpack.c.l.b16 %v93_v30  ;;  %v281_v42 = vld [vmem:[#allocation8 + $0x10] sm:$0xff]  ;;  %v282_v43 = vld [vmem:[#allocation8 + $0x18] sm:$0xff]  ;;  %v440_v30 = vld [vmem:[#allocation7 + $0x20] sm:$0xff] }
  0x18   :  { %v86_v12 = vunpack.c.l.bf16 %v84_v8  ;;  %v87_v13 = vunpack.c.l.bf16 %v85_v9  ;;  %v139_v16 = vunpack.c.l.b16 %v84_v8  ;;  %v140_v17 = vunpack.c.l.b16 %v85_v9 }
  0x19   :  { %v115_v14 = vunpack.c.l.b16 %v106_v10  ;;  %v108_v15 = vunpack.c.l.bf16 %v106_v10  ;;  %v116_v18 = vunpack.c.l.b16 %v107_v11  ;;  %v109_v19 = vunpack.c.l.bf16 %v107_v11 }
  0x1a   :  { %v88_v20 = vsub.f32 %v82_v5, %v86_v12  ;;  %v89_v21 = vsub.f32 %v83_v6, %v87_v13  ;;  %v1359_v26 = vpack.c.b16 %v140_v17, %v139_v16  ;;  %v96_v33 = vunpack.c.l.bf16 %v94_v31 }
  0x1b   :  { %v110_v22 = vsub.f32 %v1347_v4, %v108_v15  ;;  %v117_v23 = vpack.c.b16 %v116_v18, %v115_v14  ;;  %v111_v24 = vsub.f32 %v1349_v7, %v109_v19  ;;  %v97_v34 = vsub.f32 %v91_v28, %v95_v32  ;;  %v443_v32 = vld [vmem:[#allocation8 + $0x20] sm:$0xff] }
  0x1c   :  { %v1357_v25 = vpack.c.bf16 %v89_v21, %v88_v20  ;;  %v98_v35 = vsub.f32 %v92_v29, %v96_v33  ;;  %v199_v37 = vunpack.c.l.b16 %v94_v31  ;;  %v1377_v44 = vsub.f32 %v278_v40, %v281_v42  ;;  %v441_v31 = vld [vmem:[#allocation7 + $0x28] sm:$0xff] }
  0x1d   :  { %130 = vmatpush.bf16.msra.mxu0 %v117_v23  ;;  %152 = vmatpush.bf16.msra.mxu1 %v117_v23  ;;  %v112_v27 = vpack.c.bf16 %v111_v24, %v110_v22  ;;  %v1379_v45 = vsub.f32 %v279_v41, %v282_v43 }
  0x1e   :  { %v1369_v38 = vpack.c.bf16 %v98_v35, %v97_v34  ;;  %v1371_v39 = vpack.c.b16 %v199_v37, %v198_v36  ;;  %v285_v46 = vpack.c.bf16 %v1377_v44, %v1377_v44  ;;  %v444_v34 = vld [vmem:[#allocation8 + $0x28] sm:$0xff]  ;;  %v1404_v35 = vsub.f32 %v440_v30, %v443_v32  ;;  %v602_v30 = vld [vmem:[#allocation7 + $0x30] sm:$0xff] }
  0x1f   :  { %166 = vmatpush.bf16.msra.mxu2 %v112_v27  ;;  %180 = vmatpush.bf16.msra.mxu3 %v112_v27  ;;  %v286_v47 = vpack.c.bf16 %v1379_v45, %v1379_v45  ;;  %v1406_v37 = vsub.f32 %v441_v31, %v444_v34  ;;  %v603_v31 = vld [vmem:[#allocation7 + $0x38] sm:$0xff]  ;;  %v605_v32 = vld [vmem:[#allocation8 + $0x30] sm:$0xff] }
  0x20   :  { %1108 = vmatmul.msk.bf16.vlgmr.msra.gmra.mxu0 %vm119_vm0, %v1357_v25  ;;  %1109 = vmatmul.msk.bf16.vlgmr.msra.gmra.mxu1 %vm119_vm0, %v1359_v26  ;;  %v287_v48 = vunpack.c.l.bf16 %v285_v46  ;;  %v294_v49 = vunpack.c.l.b16 %v285_v46  ;;  %v447_v41 = vpack.c.bf16 %v1404_v35, %v1404_v35  ;;  %v606_v34 = vld [vmem:[#allocation8 + $0x38] sm:$0xff] }
  0x21   :  { %212 = vmatpush.bf16.msrb.mxu0 %v1371_v39  ;;  %234 = vmatpush.bf16.msrb.mxu1 %v1371_v39  ;;  %v288_v50 = vunpack.c.l.bf16 %v286_v47  ;;  %v295_v51 = vunpack.c.l.b16 %v286_v47 }
  0x22   :  { %1110 = vmatmul.msk.bf16.vlgmr.msra.gmra.mxu2 %vm119_vm0, %v1357_v25  ;;  %1111 = vmatmul.msk.bf16.vlgmr.msra.gmra.mxu3 %vm119_vm0, %v1359_v26  ;;  %v289_v54 = vsub.f32 %v1377_v44, %v287_v48  ;;  %v449_v46 = vunpack.c.l.bf16 %v447_v41  ;;  %v456_v47 = vunpack.c.l.b16 %v447_v41  ;;  %v1436_v41 = vsub.f32 %v603_v31, %v606_v34  ;;  %v765_v31 = vld [vmem:[#allocation7 + $0x48] sm:$0xff] }
  0x23   :  { %248 = vmatpush.bf16.msrb.mxu2 %v1369_v38  ;;  %262 = vmatpush.bf16.msrb.mxu3 %v1369_v38  ;;  %v290_v55 = vsub.f32 %v1379_v45, %v288_v50  ;;  %v296_v56 = vpack.c.b16 %v295_v51, %v294_v49  ;;  %v768_v34 = vld [vmem:[#allocation8 + $0x48] sm:$0xff] }
  0x25   :  { %v291_v57 = vpack.c.bf16 %v290_v55, %v289_v54  ;;  %305 = vmatpush.bf16.msra.mxu0 %v296_v56  ;;  %319 = vmatpush.bf16.msra.mxu1 %v296_v56 }
  0x27   :  { %333 = vmatpush.bf16.msra.mxu2 %v291_v57  ;;  %347 = vmatpush.bf16.msra.mxu3 %v291_v57 }
  0x9d   :  { %v132_v52 = vpop.f32.mrf.mxu0  ;;  %v154_v53 = vpop.f32.mrf.mxu1 }
  0x9e   :  { %v155_v60 = vadd.f32 %v154_v53, %v132_v52  ;;  %v451_v52 = vsub.f32 %v1404_v35, %v449_v46 }
  0xa5   :  { %v168_v58 = vpop.f32.mrf.mxu2  ;;  %v182_v59 = vpop.f32.mrf.mxu3 }
  0xa6   :  { %v183_v61 = vadd.f32 %v182_v59, %v168_v58  ;;  %v134_v63 = vpop.f32.mrf.mxu0  ;;  %v156_v0 = vpop.f32.mrf.mxu1 }
  0xa7   :  { %v157_v3 = vadd.f32 %v156_v0, %v134_v63 }
  0xa8   :  { %v187_v62 = vadd.f32 %v183_v61, %v155_v60 }
  0xaa   :  { %v189_v5 = vpack.c.bf16 %v187_v62, %v187_v62 }
  0xac   :  { %v191_v9 = vunpack.c.l.bf16 %v189_v5  ;;  %v221_v11 = vunpack.c.l.b16 %v189_v5 }
  0xad   :  { %v170_v1 = vpop.f32.mrf.mxu2  ;;  %v184_v2 = vpop.f32.mrf.mxu3 }
  0xae   :  { %v185_v6 = vadd.f32 %v184_v2, %v170_v1  ;;  %v193_v14 = vsub.f32 %v187_v62, %v191_v9 }
  0xb0   :  { %v188_v8 = vadd.f32 %v185_v6, %v157_v3 }
  0xb2   :  { %v190_v10 = vpack.c.bf16 %v188_v8, %v188_v8 }
  0xb4   :  { %v192_v12 = vunpack.c.l.bf16 %v190_v10  ;;  %v222_v13 = vunpack.c.l.b16 %v190_v10 }
  0xb6   :  { %v194_v15 = vsub.f32 %v188_v8, %v192_v12  ;;  %v223_v16 = vpack.c.b16 %v222_v13, %v221_v11 }
  0xb8   :  { %v195_v17 = vpack.c.bf16 %v194_v15, %v193_v14  ;;  %1113 = vmatmul.msk.bf16.vlgmr.msrb.gmra.mxu1 %vm119_vm0, %v223_v16  ;;  %1115 = vmatmul.msk.bf16.vlgmr.msrb.gmra.mxu3 %vm119_vm0, %v223_v16 }
  0xb9   :  { %423 = vmatpush.bf16.msrb.mxu3 %v1369_v38  ;;  %395 = vmatpush.bf16.msrb.mxu1 %v1371_v39 }
  0xba   :  { %1112 = vmatmul.msk.bf16.vlgmr.msrb.gmra.mxu0 %vm119_vm0, %v195_v17  ;;  %1114 = vmatmul.msk.bf16.vlgmr.msrb.gmra.mxu2 %vm119_vm0, %v195_v17 }
  0xbb   :  { %409 = vmatpush.bf16.msrb.mxu2 %v1369_v38  ;;  %373 = vmatpush.bf16.msrb.mxu0 %v1371_v39 }
  0xc8   :  { %1117 = vmatmul.msk.bf16.vlgmr.msra.gmra.mxu1 %vm119_vm0, %v1359_v26  ;;  %1119 = vmatmul.msk.bf16.vlgmr.msra.gmra.mxu3 %vm119_vm0, %v1359_v26 }
  0xca   :  { %1116 = vmatmul.msk.bf16.vlgmr.msra.gmra.mxu0 %vm119_vm0, %v1357_v25  ;;  %1118 = vmatmul.msk.bf16.vlgmr.msra.gmra.mxu2 %vm119_vm0, %v1357_v25 }
 0x135   :  { %v236_v18 = vpop.f32.mrf.mxu1 }
 0x137   :  { %v214_v19 = vpop.f32.mrf.mxu0 }
 0x138   :  { %v237_v22 = vadd.f32 %v236_v18, %v214_v19 }
 0x13b   :  { %v264_v20 = vpop.f32.mrf.mxu3 }
 0x13d   :  { %v250_v21 = vpop.f32.mrf.mxu2  ;;  %v238_v27 = vpop.f32.mrf.mxu1 }
 0x13e   :  { %v265_v23 = vadd.f32 %v264_v20, %v250_v21 }
 0x13f   :  { %v216_v24 = vpop.f32.mrf.mxu0 }
 0x140   :  { %v269_v28 = vadd.f32 %v265_v23, %v237_v22  ;;  %v239_v42 = vadd.f32 %v238_v27, %v216_v24 }
 0x142   :  { %v271_v29 = vsub.f32 %v1347_v4, %v269_v28  ;;  %v448_v4 = vpack.c.bf16 %v1406_v37, %v1406_v37 }
 0x143   :  { %v266_v33 = vpop.f32.mrf.mxu3 }
 0x144   :  { %v273_v36 = vmul.f32 %v271_v29, %v271_v29  ;;  %v450_v49 = vunpack.c.l.bf16 %v448_v4  ;;  %v457_v50 = vunpack.c.l.b16 %v448_v4 }
 0x145   :  { %v252_v40 = vpop.f32.mrf.mxu2  ;;  %v321_v54 = vpop.f32.mrf.mxu1 }
 0x146   :  { %275 = vst.msk [vmem:[#allocation10] sm:$0xff] %vm119_vm0, %v273_v36  ;;  %v267_v43 = vadd.f32 %v266_v33, %v252_v40  ;;  %v452_v55 = vsub.f32 %v1406_v37, %v450_v49  ;;  %v458_v56 = vpack.c.b16 %v457_v50, %v456_v47  ;;  %v1434_v36 = vsub.f32 %v602_v30, %v605_v32  ;;  %v764_v30 = vld [vmem:[#allocation7 + $0x40] sm:$0xff] }
 0x147   :  { %v307_v51 = vpop.f32.mrf.mxu0  ;;  %v767_v32 = vld [vmem:[#allocation8 + $0x40] sm:$0xff] }
 0x148   :  { %v270_v48 = vadd.f32 %v267_v43, %v239_v42  ;;  %v453_v59 = vpack.c.bf16 %v452_v55, %v451_v52  ;;  %467 = vmatpush.bf16.msra.mxu0 %v458_v56  ;;  %481 = vmatpush.bf16.msra.mxu1 %v458_v56  ;;  %v322_v61 = vadd.f32 %v321_v54, %v307_v51 }
 0x149   :  { %v609_v43 = vpack.c.bf16 %v1434_v36, %v1434_v36 }
 0x14a   :  { %v272_v53 = vsub.f32 %v1349_v7, %v270_v48  ;;  %495 = vmatpush.bf16.msra.mxu2 %v453_v59  ;;  %509 = vmatpush.bf16.msra.mxu3 %v453_v59 }
 0x14b   :  { %v349_v57 = vpop.f32.mrf.mxu3  ;;  %v611_v47 = vunpack.c.l.bf16 %v609_v43  ;;  %v618_v48 = vunpack.c.l.b16 %v609_v43  ;;  %v1466_v43 = vsub.f32 %v765_v31, %v768_v34  ;;  %v927_v31 = vld [vmem:[#allocation7 + $0x58] sm:$0xff] }
 0x14c   :  { %v274_v58 = vmul.f32 %v272_v53, %v272_v53  ;;  %v930_v34 = vld [vmem:[#allocation8 + $0x58] sm:$0xff] }
 0x14d   :  { %v335_v60 = vpop.f32.mrf.mxu2  ;;  %v323_v1 = vpop.f32.mrf.mxu1  ;;  %v613_v53 = vsub.f32 %v1434_v36, %v611_v47 }
 0x14e   :  { %276 = vst.msk [vmem:[#allocation10 + $0x8] sm:$0xff] %vm119_vm0, %v274_v58  ;;  %v350_v62 = vadd.f32 %v349_v57, %v335_v60 }
 0x14f   :  { %v309_v0 = vpop.f32.mrf.mxu0 }
 0x150   :  { %v354_v63 = vadd.f32 %v350_v62, %v322_v61  ;;  %v324_v5 = vadd.f32 %v323_v1, %v309_v0 }
 0x152   :  { %v356_v3 = vpack.c.bf16 %v354_v63, %v354_v63 }
 0x153   :  { %v351_v7 = vpop.f32.mrf.mxu3 }
 0x154   :  { %v358_v9 = vunpack.c.l.bf16 %v356_v3  ;;  %v382_v11 = vunpack.c.l.b16 %v356_v3 }
 0x155   :  { %v337_v2 = vpop.f32.mrf.mxu2 }
 0x156   :  { %v352_v6 = vadd.f32 %v351_v7, %v337_v2  ;;  %v360_v14 = vsub.f32 %v354_v63, %v358_v9 }
 0x158   :  { %v355_v8 = vadd.f32 %v352_v6, %v324_v5 }
 0x15a   :  { %v357_v10 = vpack.c.bf16 %v355_v8, %v355_v8 }
 0x15c   :  { %v359_v12 = vunpack.c.l.bf16 %v357_v10  ;;  %v383_v13 = vunpack.c.l.b16 %v357_v10 }
 0x15e   :  { %v361_v15 = vsub.f32 %v355_v8, %v359_v12  ;;  %v384_v16 = vpack.c.b16 %v383_v13, %v382_v11 }
 0x160   :  { %v362_v17 = vpack.c.bf16 %v361_v15, %v360_v14  ;;  %1121 = vmatmul.msk.bf16.vlgmr.msrb.gmra.mxu1 %vm119_vm0, %v384_v16  ;;  %1123 = vmatmul.msk.bf16.vlgmr.msrb.gmra.mxu3 %vm119_vm0, %v384_v16 }
 0x161   :  { %585 = vmatpush.bf16.msrb.mxu3 %v1369_v38  ;;  %557 = vmatpush.bf16.msrb.mxu1 %v1371_v39 }
 0x162   :  { %1120 = vmatmul.msk.bf16.vlgmr.msrb.gmra.mxu0 %vm119_vm0, %v362_v17  ;;  %1122 = vmatmul.msk.bf16.vlgmr.msrb.gmra.mxu2 %vm119_vm0, %v362_v17 }
 0x163   :  { %571 = vmatpush.bf16.msrb.mxu2 %v1369_v38  ;;  %535 = vmatpush.bf16.msrb.mxu0 %v1371_v39 }
 0x170   :  { %1125 = vmatmul.msk.bf16.vlgmr.msra.gmra.mxu1 %vm119_vm0, %v1359_v26  ;;  %1127 = vmatmul.msk.bf16.vlgmr.msra.gmra.mxu3 %vm119_vm0, %v1359_v26 }
 0x172   :  { %1124 = vmatmul.msk.bf16.vlgmr.msra.gmra.mxu0 %vm119_vm0, %v1357_v25  ;;  %1126 = vmatmul.msk.bf16.vlgmr.msra.gmra.mxu2 %vm119_vm0, %v1357_v25 }
 0x1dd   :  { %v397_v18 = vpop.f32.mrf.mxu1 }
 0x1df   :  { %v375_v19 = vpop.f32.mrf.mxu0 }
 0x1e0   :  { %v398_v22 = vadd.f32 %v397_v18, %v375_v19 }
 0x1e3   :  { %v425_v20 = vpop.f32.mrf.mxu3 }
 0x1e5   :  { %v411_v21 = vpop.f32.mrf.mxu2  ;;  %v399_v27 = vpop.f32.mrf.mxu1 }
 0x1e6   :  { %v426_v23 = vadd.f32 %v425_v20, %v411_v21 }
 0x1e7   :  { %v377_v24 = vpop.f32.mrf.mxu0 }
 0x1e8   :  { %v430_v28 = vadd.f32 %v426_v23, %v398_v22  ;;  %v400_v4 = vadd.f32 %v399_v27, %v377_v24 }
 0x1ea   :  { %v432_v29 = vsub.f32 %v1377_v44, %v430_v28  ;;  %v610_v44 = vpack.c.bf16 %v1436_v41, %v1436_v41 }
 0x1eb   :  { %v427_v33 = vpop.f32.mrf.mxu3 }
 0x1ec   :  { %v434_v40 = vmul.f32 %v432_v29, %v432_v29  ;;  %v612_v50 = vunpack.c.l.bf16 %v610_v44  ;;  %v619_v51 = vunpack.c.l.b16 %v610_v44 }
 0x1ed   :  { %v413_v42 = vpop.f32.mrf.mxu2  ;;  %v483_v55 = vpop.f32.mrf.mxu1 }
 0x1ee   :  { %437 = vst.msk [vmem:[#allocation10 + $0x10] sm:$0xff] %vm119_vm0, %v434_v40  ;;  %v428_v46 = vadd.f32 %v427_v33, %v413_v42  ;;  %v614_v56 = vsub.f32 %v1436_v41, %v612_v50  ;;  %v620_v57 = vpack.c.b16 %v619_v51, %v618_v48  ;;  %v1464_v40 = vsub.f32 %v764_v30, %v767_v32  ;;  %v926_v30 = vld [vmem:[#allocation7 + $0x50] sm:$0xff] }
 0x1ef   :  { %v469_v52 = vpop.f32.mrf.mxu0  ;;  %v929_v32 = vld [vmem:[#allocation8 + $0x50] sm:$0xff] }
 0x1f0   :  { %v431_v49 = vadd.f32 %v428_v46, %v400_v4  ;;  %v615_v60 = vpack.c.bf16 %v614_v56, %v613_v53  ;;  %629 = vmatpush.bf16.msra.mxu0 %v620_v57  ;;  %643 = vmatpush.bf16.msra.mxu1 %v620_v57  ;;  %v484_v62 = vadd.f32 %v483_v55, %v469_v52 }
 0x1f1   :  { %v771_v46 = vpack.c.bf16 %v1464_v40, %v1464_v40 }
 0x1f2   :  { %v433_v54 = vsub.f32 %v1379_v45, %v431_v49  ;;  %657 = vmatpush.bf16.msra.mxu2 %v615_v60  ;;  %671 = vmatpush.bf16.msra.mxu3 %v615_v60 }
 0x1f3   :  { %v511_v58 = vpop.f32.mrf.mxu3  ;;  %v773_v48 = vunpack.c.l.bf16 %v771_v46  ;;  %v780_v49 = vunpack.c.l.b16 %v771_v46  ;;  %v1496_v46 = vsub.f32 %v927_v31, %v930_v34 }
 0x1f4   :  { %v435_v59 = vmul.f32 %v433_v54, %v433_v54 }
 0x1f5   :  { %v497_v61 = vpop.f32.mrf.mxu2  ;;  %v485_v7 = vpop.f32.mrf.mxu1  ;;  %v775_v54 = vsub.f32 %v1464_v40, %v773_v48 }
 0x1f6   :  { %438 = vst.msk [vmem:[#allocation10 + $0x18] sm:$0xff] %vm119_vm0, %v435_v59  ;;  %v512_v63 = vadd.f32 %v511_v58, %v497_v61 }
 0x1f7   :  { %v471_v1 = vpop.f32.mrf.mxu0 }
 0x1f8   :  { %v516_v0 = vadd.f32 %v512_v63, %v484_v62  ;;  %v486_v5 = vadd.f32 %v485_v7, %v471_v1 }
 0x1fa   :  { %v518_v3 = vpack.c.bf16 %v516_v0, %v516_v0 }
 0x1fb   :  { %v513_v45 = vpop.f32.mrf.mxu3 }
 0x1fc   :  { %v520_v9 = vunpack.c.l.bf16 %v518_v3  ;;  %v544_v11 = vunpack.c.l.b16 %v518_v3 }
 0x1fd   :  { %v499_v2 = vpop.f32.mrf.mxu2 }
 0x1fe   :  { %v514_v6 = vadd.f32 %v513_v45, %v499_v2  ;;  %v522_v14 = vsub.f32 %v516_v0, %v520_v9 }
 0x200   :  { %v517_v8 = vadd.f32 %v514_v6, %v486_v5 }
 0x202   :  { %v519_v10 = vpack.c.bf16 %v517_v8, %v517_v8 }
 0x204   :  { %v521_v12 = vunpack.c.l.bf16 %v519_v10  ;;  %v545_v13 = vunpack.c.l.b16 %v519_v10 }
 0x206   :  { %v523_v15 = vsub.f32 %v517_v8, %v521_v12  ;;  %v546_v16 = vpack.c.b16 %v545_v13, %v544_v11 }
 0x208   :  { %v524_v17 = vpack.c.bf16 %v523_v15, %v522_v14  ;;  %1129 = vmatmul.msk.bf16.vlgmr.msrb.gmra.mxu1 %vm119_vm0, %v546_v16  ;;  %1131 = vmatmul.msk.bf16.vlgmr.msrb.gmra.mxu3 %vm119_vm0, %v546_v16 }
 0x209   :  { %747 = vmatpush.bf16.msrb.mxu3 %v1369_v38  ;;  %719 = vmatpush.bf16.msrb.mxu1 %v1371_v39 }
 0x20a   :  { %1128 = vmatmul.msk.bf16.vlgmr.msrb.gmra.mxu0 %vm119_vm0, %v524_v17  ;;  %1130 = vmatmul.msk.bf16.vlgmr.msrb.gmra.mxu2 %vm119_vm0, %v524_v17 }
 0x20b   :  { %733 = vmatpush.bf16.msrb.mxu2 %v1369_v38  ;;  %697 = vmatpush.bf16.msrb.mxu0 %v1371_v39 }
 0x218   :  { %1133 = vmatmul.msk.bf16.vlgmr.msra.gmra.mxu1 %vm119_vm0, %v1359_v26  ;;  %1135 = vmatmul.msk.bf16.vlgmr.msra.gmra.mxu3 %vm119_vm0, %v1359_v26 }
 0x21a   :  { %1132 = vmatmul.msk.bf16.vlgmr.msra.gmra.mxu0 %vm119_vm0, %v1357_v25  ;;  %1134 = vmatmul.msk.bf16.vlgmr.msra.gmra.mxu2 %vm119_vm0, %v1357_v25 }
 0x285   :  { %v559_v18 = vpop.f32.mrf.mxu1 }
 0x287   :  { %v537_v19 = vpop.f32.mrf.mxu0 }
 0x288   :  { %v560_v22 = vadd.f32 %v559_v18, %v537_v19 }
 0x28b   :  { %v587_v20 = vpop.f32.mrf.mxu3 }
 0x28d   :  { %v573_v21 = vpop.f32.mrf.mxu2  ;;  %v561_v27 = vpop.f32.mrf.mxu1 }
 0x28e   :  { %v588_v23 = vadd.f32 %v587_v20, %v573_v21 }
 0x28f   :  { %v539_v24 = vpop.f32.mrf.mxu0 }
 0x290   :  { %v592_v28 = vadd.f32 %v588_v23, %v560_v22  ;;  %v562_v44 = vadd.f32 %v561_v27, %v539_v24 }
 0x292   :  { %v594_v29 = vsub.f32 %v1404_v35, %v592_v28  ;;  %v772_v35 = vpack.c.bf16 %v1466_v43, %v1466_v43 }
 0x293   :  { %v589_v33 = vpop.f32.mrf.mxu3 }
 0x294   :  { %v596_v42 = vmul.f32 %v594_v29, %v594_v29  ;;  %v774_v51 = vunpack.c.l.bf16 %v772_v35  ;;  %v781_v52 = vunpack.c.l.b16 %v772_v35 }
 0x295   :  { %v575_v4 = vpop.f32.mrf.mxu2  ;;  %v645_v56 = vpop.f32.mrf.mxu1 }
 0x296   :  { %599 = vst.msk [vmem:[#allocation10 + $0x20] sm:$0xff] %vm119_vm0, %v596_v42  ;;  %v590_v47 = vadd.f32 %v589_v33, %v575_v4  ;;  %v776_v57 = vsub.f32 %v1466_v43, %v774_v51  ;;  %v782_v58 = vpack.c.b16 %v781_v52, %v780_v49  ;;  %v1494_v42 = vsub.f32 %v926_v30, %v929_v32 }
 0x297   :  { %v631_v53 = vpop.f32.mrf.mxu0 }
 0x298   :  { %v593_v50 = vadd.f32 %v590_v47, %v562_v44  ;;  %v777_v61 = vpack.c.bf16 %v776_v57, %v775_v54  ;;  %791 = vmatpush.bf16.msra.mxu0 %v782_v58  ;;  %805 = vmatpush.bf16.msra.mxu1 %v782_v58  ;;  %v646_v63 = vadd.f32 %v645_v56, %v631_v53 }
 0x299   :  { %v933_v47 = vpack.c.bf16 %v1494_v42, %v1494_v42 }
 0x29a   :  { %v595_v55 = vsub.f32 %v1406_v37, %v593_v50  ;;  %819 = vmatpush.bf16.msra.mxu2 %v777_v61  ;;  %833 = vmatpush.bf16.msra.mxu3 %v777_v61 }
 0x29b   :  { %v673_v59 = vpop.f32.mrf.mxu3  ;;  %v935_v49 = vunpack.c.l.bf16 %v933_v47  ;;  %v942_v50 = vunpack.c.l.b16 %v933_v47 }
 0x29c   :  { %v597_v60 = vmul.f32 %v595_v55, %v595_v55 }
 0x29d   :  { %v659_v62 = vpop.f32.mrf.mxu2  ;;  %v647_v45 = vpop.f32.mrf.mxu1  ;;  %v937_v55 = vsub.f32 %v1494_v42, %v935_v49 }
 0x29e   :  { %600 = vst.msk [vmem:[#allocation10 + $0x28] sm:$0xff] %vm119_vm0, %v597_v60  ;;  %v674_v0 = vadd.f32 %v673_v59, %v659_v62 }
 0x29f   :  { %v633_v7 = vpop.f32.mrf.mxu0 }
 0x2a0   :  { %v678_v1 = vadd.f32 %v674_v0, %v646_v63  ;;  %v648_v5 = vadd.f32 %v647_v45, %v633_v7 }
 0x2a2   :  { %v680_v3 = vpack.c.bf16 %v678_v1, %v678_v1 }
 0x2a3   :  { %v675_v37 = vpop.f32.mrf.mxu3 }
 0x2a4   :  { %v682_v9 = vunpack.c.l.bf16 %v680_v3  ;;  %v706_v11 = vunpack.c.l.b16 %v680_v3 }
 0x2a5   :  { %v661_v2 = vpop.f32.mrf.mxu2 }
 0x2a6   :  { %v676_v6 = vadd.f32 %v675_v37, %v661_v2  ;;  %v684_v14 = vsub.f32 %v678_v1, %v682_v9 }
 0x2a8   :  { %v679_v8 = vadd.f32 %v676_v6, %v648_v5 }
 0x2aa   :  { %v681_v10 = vpack.c.bf16 %v679_v8, %v679_v8 }
 0x2ac   :  { %v683_v12 = vunpack.c.l.bf16 %v681_v10  ;;  %v707_v13 = vunpack.c.l.b16 %v681_v10 }
 0x2ae   :  { %v685_v15 = vsub.f32 %v679_v8, %v683_v12  ;;  %v708_v16 = vpack.c.b16 %v707_v13, %v706_v11 }
 0x2b0   :  { %v686_v17 = vpack.c.bf16 %v685_v15, %v684_v14  ;;  %1137 = vmatmul.msk.bf16.vlgmr.msrb.gmra.mxu1 %vm119_vm0, %v708_v16  ;;  %1139 = vmatmul.msk.bf16.vlgmr.msrb.gmra.mxu3 %vm119_vm0, %v708_v16 }
 0x2b1   :  { %909 = vmatpush.bf16.msrb.mxu3 %v1369_v38  ;;  %881 = vmatpush.bf16.msrb.mxu1 %v1371_v39 }
 0x2b2   :  { %1136 = vmatmul.msk.bf16.vlgmr.msrb.gmra.mxu0 %vm119_vm0, %v686_v17  ;;  %1138 = vmatmul.msk.bf16.vlgmr.msrb.gmra.mxu2 %vm119_vm0, %v686_v17 }
 0x2b3   :  { %895 = vmatpush.bf16.msrb.mxu2 %v1369_v38  ;;  %859 = vmatpush.bf16.msrb.mxu0 %v1371_v39 }
 0x2c0   :  { %1141 = vmatmul.msk.bf16.vlgmr.msra.gmra.mxu1 %vm119_vm0, %v1359_v26  ;;  %1143 = vmatmul.msk.bf16.vlgmr.msra.gmra.mxu3 %vm119_vm0, %v1359_v26 }
 0x2c2   :  { %1140 = vmatmul.msk.bf16.vlgmr.msra.gmra.mxu0 %vm119_vm0, %v1357_v25  ;;  %1142 = vmatmul.msk.bf16.vlgmr.msra.gmra.mxu2 %vm119_vm0, %v1357_v25 }
 0x32d   :  { %v721_v18 = vpop.f32.mrf.mxu1 }
 0x32f   :  { %v699_v19 = vpop.f32.mrf.mxu0 }
 0x330   :  { %v722_v22 = vadd.f32 %v721_v18, %v699_v19 }
 0x333   :  { %v749_v20 = vpop.f32.mrf.mxu3 }
 0x335   :  { %v735_v21 = vpop.f32.mrf.mxu2  ;;  %v723_v27 = vpop.f32.mrf.mxu1 }
 0x336   :  { %v750_v23 = vadd.f32 %v749_v20, %v735_v21 }
 0x337   :  { %v701_v24 = vpop.f32.mrf.mxu0 }
 0x338   :  { %v754_v28 = vadd.f32 %v750_v23, %v722_v22  ;;  %v724_v35 = vadd.f32 %v723_v27, %v701_v24 }
 0x33a   :  { %v756_v29 = vsub.f32 %v1434_v36, %v754_v28  ;;  %v934_v36 = vpack.c.bf16 %v1496_v46, %v1496_v46 }
 0x33b   :  { %v751_v33 = vpop.f32.mrf.mxu3 }
 0x33c   :  { %v758_v4 = vmul.f32 %v756_v29, %v756_v29  ;;  %v936_v52 = vunpack.c.l.bf16 %v934_v36  ;;  %v943_v53 = vunpack.c.l.b16 %v934_v36 }
 0x33d   :  { %v737_v44 = vpop.f32.mrf.mxu2  ;;  %v807_v57 = vpop.f32.mrf.mxu1 }
 0x33e   :  { %761 = vst.msk [vmem:[#allocation10 + $0x30] sm:$0xff] %vm119_vm0, %v758_v4  ;;  %v752_v48 = vadd.f32 %v751_v33, %v737_v44  ;;  %v938_v58 = vsub.f32 %v1496_v46, %v936_v52  ;;  %v944_v59 = vpack.c.b16 %v943_v53, %v942_v50 }
 0x33f   :  { %v793_v54 = vpop.f32.mrf.mxu0 }
 0x340   :  { %v755_v51 = vadd.f32 %v752_v48, %v724_v35  ;;  %v939_v62 = vpack.c.bf16 %v938_v58, %v937_v55  ;;  %953 = vmatpush.bf16.msra.mxu0 %v944_v59  ;;  %967 = vmatpush.bf16.msra.mxu1 %v944_v59  ;;  %v808_v0 = vadd.f32 %v807_v57, %v793_v54 }
 0x342   :  { %v757_v56 = vsub.f32 %v1436_v41, %v755_v51  ;;  %981 = vmatpush.bf16.msra.mxu2 %v939_v62  ;;  %995 = vmatpush.bf16.msra.mxu3 %v939_v62 }
 0x343   :  { %v835_v60 = vpop.f32.mrf.mxu3 }
 0x344   :  { %v759_v61 = vmul.f32 %v757_v56, %v757_v56 }
 0x345   :  { %v821_v63 = vpop.f32.mrf.mxu2  ;;  %v809_v37 = vpop.f32.mrf.mxu1 }
 0x346   :  { %762 = vst.msk [vmem:[#allocation10 + $0x38] sm:$0xff] %vm119_vm0, %v759_v61  ;;  %v836_v1 = vadd.f32 %v835_v60, %v821_v63 }
 0x347   :  { %v795_v45 = vpop.f32.mrf.mxu0 }
 0x348   :  { %v840_v7 = vadd.f32 %v836_v1, %v808_v0  ;;  %v810_v5 = vadd.f32 %v809_v37, %v795_v45 }
 0x34a   :  { %v842_v3 = vpack.c.bf16 %v840_v7, %v840_v7 }
 0x34b   :  { %v837_v41 = vpop.f32.mrf.mxu3 }
 0x34c   :  { %v844_v9 = vunpack.c.l.bf16 %v842_v3  ;;  %v868_v11 = vunpack.c.l.b16 %v842_v3 }
 0x34d   :  { %v823_v2 = vpop.f32.mrf.mxu2 }
 0x34e   :  { %v838_v6 = vadd.f32 %v837_v41, %v823_v2  ;;  %v846_v14 = vsub.f32 %v840_v7, %v844_v9 }
 0x350   :  { %v841_v8 = vadd.f32 %v838_v6, %v810_v5 }
 0x352   :  { %v843_v10 = vpack.c.bf16 %v841_v8, %v841_v8 }
 0x354   :  { %v845_v12 = vunpack.c.l.bf16 %v843_v10  ;;  %v869_v13 = vunpack.c.l.b16 %v843_v10 }
 0x356   :  { %v847_v15 = vsub.f32 %v841_v8, %v845_v12  ;;  %v870_v16 = vpack.c.b16 %v869_v13, %v868_v11 }
 0x358   :  { %v848_v17 = vpack.c.bf16 %v847_v15, %v846_v14  ;;  %1145 = vmatmul.msk.bf16.vlgmr.msrb.gmra.mxu1 %vm119_vm0, %v870_v16  ;;  %1147 = vmatmul.msk.bf16.vlgmr.msrb.gmra.mxu3 %vm119_vm0, %v870_v16 }
 0x359   :  { %1071 = vmatpush.bf16.msrb.mxu3 %v1369_v38  ;;  %1043 = vmatpush.bf16.msrb.mxu1 %v1371_v39 }
 0x35a   :  { %1144 = vmatmul.msk.bf16.vlgmr.msrb.gmra.mxu0 %vm119_vm0, %v848_v17  ;;  %1146 = vmatmul.msk.bf16.vlgmr.msrb.gmra.mxu2 %vm119_vm0, %v848_v17 }
 0x35b   :  { %1057 = vmatpush.bf16.msrb.mxu2 %v1369_v38  ;;  %1021 = vmatpush.bf16.msrb.mxu0 %v1371_v39 }
 0x368   :  { %1149 = vmatmul.msk.bf16.vlgmr.msra.gmra.mxu1 %vm119_vm0, %v1359_v26  ;;  %1151 = vmatmul.msk.bf16.vlgmr.msra.gmra.mxu3 %vm119_vm0, %v1359_v26 }
 0x36a   :  { %1148 = vmatmul.msk.bf16.vlgmr.msra.gmra.mxu0 %vm119_vm0, %v1357_v25  ;;  %1150 = vmatmul.msk.bf16.vlgmr.msra.gmra.mxu2 %vm119_vm0, %v1357_v25 }
 0x3d5   :  { %v883_v18 = vpop.f32.mrf.mxu1 }
 0x3d7   :  { %v861_v19 = vpop.f32.mrf.mxu0 }
 0x3d8   :  { %v884_v22 = vadd.f32 %v883_v18, %v861_v19 }
 0x3db   :  { %v911_v20 = vpop.f32.mrf.mxu3 }
 0x3dd   :  { %v897_v21 = vpop.f32.mrf.mxu2  ;;  %v885_v39 = vpop.f32.mrf.mxu1 }
 0x3de   :  { %v912_v38 = vadd.f32 %v911_v20, %v897_v21 }
 0x3df   :  { %v863_v23 = vpop.f32.mrf.mxu0 }
 0x3e0   :  { %v916_v24 = vadd.f32 %v912_v38, %v884_v22  ;;  %v886_v30 = vadd.f32 %v885_v39, %v863_v23 }
 0x3e2   :  { %v918_v27 = vsub.f32 %v1464_v40, %v916_v24 }
 0x3e3   :  { %v913_v28 = vpop.f32.mrf.mxu3 }
 0x3e4   :  { %v920_v29 = vmul.f32 %v918_v27, %v918_v27 }
 0x3e5   :  { %v899_v26 = vpop.f32.mrf.mxu2  ;;  %v969_v34 = vpop.f32.mrf.mxu1 }
 0x3e6   :  { %923 = vst.msk [vmem:[#allocation10 + $0x40] sm:$0xff] %vm119_vm0, %v920_v29  ;;  %v914_v31 = vadd.f32 %v913_v28, %v899_v26 }
 0x3e7   :  { %v955_v25 = vpop.f32.mrf.mxu0 }
 0x3e8   :  { %v917_v32 = vadd.f32 %v914_v31, %v886_v30  ;;  %v970_v35 = vadd.f32 %v969_v34, %v955_v25 }
 0x3ea   :  { %v919_v33 = vsub.f32 %v1466_v43, %v917_v32 }
 0x3eb   :  { %v997_v4 = vpop.f32.mrf.mxu3 }
 0x3ec   :  { %v921_v44 = vmul.f32 %v919_v33, %v919_v33 }
 0x3ed   :  { %v983_v47 = vpop.f32.mrf.mxu2  ;;  %v971_v49 = vpop.f32.mrf.mxu1 }
 0x3ee   :  { %924 = vst.msk [vmem:[#allocation10 + $0x48] sm:$0xff] %vm119_vm0, %v921_v44  ;;  %v998_v48 = vadd.f32 %v997_v4, %v983_v47 }
 0x3ef   :  { %v957_v36 = vpop.f32.mrf.mxu0 }
 0x3f0   :  { %v1002_v40 = vadd.f32 %v998_v48, %v970_v35  ;;  %v972_v53 = vadd.f32 %v971_v49, %v957_v36 }
 0x3f2   :  { %v1004_v52 = vpack.c.bf16 %v1002_v40, %v1002_v40 }
 0x3f3   :  { %v999_v50 = vpop.f32.mrf.mxu3 }
 0x3f4   :  { %v1006_v56 = vunpack.c.l.bf16 %v1004_v52  ;;  %v1030_v43 = vunpack.c.l.b16 %v1004_v52 }
 0x3f5   :  { %v985_v51 = vpop.f32.mrf.mxu2 }
 0x3f6   :  { %v1000_v54 = vadd.f32 %v999_v50, %v985_v51  ;;  %v1008_v60 = vsub.f32 %v1002_v40, %v1006_v56 }
 0x3f8   :  { %v1003_v55 = vadd.f32 %v1000_v54, %v972_v53 }
 0x3fa   :  { %v1005_v57 = vpack.c.bf16 %v1003_v55, %v1003_v55 }
 0x3fc   :  { %v1007_v58 = vunpack.c.l.bf16 %v1005_v57  ;;  %v1031_v59 = vunpack.c.l.b16 %v1005_v57 }
 0x3fe   :  { %v1009_v61 = vsub.f32 %v1003_v55, %v1007_v58  ;;  %v1032_v62 = vpack.c.b16 %v1031_v59, %v1030_v43 }
 0x400   :  { %v1010_v63 = vpack.c.bf16 %v1009_v61, %v1008_v60  ;;  %1153 = vmatmul.msk.bf16.vlgmr.msrb.gmra.mxu1 %vm119_vm0, %v1032_v62  ;;  %1155 = vmatmul.msk.bf16.vlgmr.msrb.gmra.mxu3 %vm119_vm0, %v1032_v62 }
 0x402   :  { %1152 = vmatmul.msk.bf16.vlgmr.msrb.gmra.mxu0 %vm119_vm0, %v1010_v63  ;;  %1154 = vmatmul.msk.bf16.vlgmr.msrb.gmra.mxu2 %vm119_vm0, %v1010_v63 }
 0x47d   :  { %v1045_v1 = vpop.f32.mrf.mxu1 }
 0x47f   :  { %v1023_v0 = vpop.f32.mrf.mxu0 }
 0x480   :  { %v1046_v37 = vadd.f32 %v1045_v1, %v1023_v0 }
 0x483   :  { %v1073_v7 = vpop.f32.mrf.mxu3 }
 0x485   :  { %v1059_v45 = vpop.f32.mrf.mxu2  ;;  %v1047_v6 = vpop.f32.mrf.mxu1 }
 0x486   :  { %v1074_v41 = vadd.f32 %v1073_v7, %v1059_v45 }
 0x487   :  { %v1025_v5 = vpop.f32.mrf.mxu0 }
 0x488   :  { %v1078_v2 = vadd.f32 %v1074_v41, %v1046_v37  ;;  %v1048_v11 = vadd.f32 %v1047_v6, %v1025_v5 }
 0x48a   :  { %v1080_v3 = vsub.f32 %v1494_v42, %v1078_v2 }
 0x48b   :  { %v1075_v9 = vpop.f32.mrf.mxu3 }
 0x48c   :  { %v1082_v8 = vmul.f32 %v1080_v3, %v1080_v3 }
 0x48d   :  { %v1061_v10 = vpop.f32.mrf.mxu2 }
 0x48e   :  { %1085 = vst.msk [vmem:[#allocation10 + $0x50] sm:$0xff] %vm119_vm0, %v1082_v8  ;;  %v1076_v12 = vadd.f32 %v1075_v9, %v1061_v10 }
 0x490   :  { %v1079_v13 = vadd.f32 %v1076_v12, %v1048_v11 }
 0x492   :  { %v1081_v14 = vsub.f32 %v1496_v46, %v1079_v13 }
 0x494   :  { %v1083_v15 = vmul.f32 %v1081_v14, %v1081_v14 }
 0x496   :  { %1086 = vst.msk [vmem:[#allocation10 + $0x58] sm:$0xff] %vm119_vm0, %v1083_v15 }
 0x497   :  { %1099 = dma.vmem_to_hbm [thread:$0]  %s1092_s8, 1536, %s1094_s11, [#allocation4], %s1292_s23, %s1292_s23, %s1293_s24  }
 0x498   :  { %1289 = dma.done.wait [#allocation4], 1536  }
 0x499   :  { %1290 = vsyncadd [#allocation4], 4294965760 }
 0x49a   :  { %1104 = vsyncpa [#allocation3], 1 }
 0x49b   :  { %1105 = vsyncpa [#allocation6], 1 }
 0x49c   :  { %1106 = vsyncpa [#allocation9], 1 }
 0x49d   :  { %1107 = vsyncpa [#allocation4], 1 }

</bundles_post_ra>
